<compile_context>
chip_gen: v6e
topology: v6e:2x2x1
jax: 0.10.0
libtpu: 0.0.40
codegen_flags: <defaults>
</compile_context>

<pallas_src>
import functools
import math

import jax
import jax.numpy as jnp
from jax.experimental import pallas as pl
from jax.experimental.pallas import tpu as pltpu

LANE = 128


def _pad_up(d):
    return ((d + LANE - 1) // LANE) * LANE


# ----------------------------------------------------------------------------
# Fused MLP kernel: one grid step pushes TILE_B rows through every layer.
# ----------------------------------------------------------------------------
def _mlp_fused_kernel(x_ref, *refs, activate, neg_slope):
    out_ref = refs[-1]
    wb = refs[:-1]  # interleaved (w0, b0, w1, b1, ...)
    h = x_ref[...]
    for li, act in enumerate(activate):
        w = wb[2 * li][...]
        b = wb[2 * li + 1][...]
        h = jnp.dot(h, w, preferred_element_type=jnp.float32) + b
        if act:
            # LeakyReLU (2 VALU ops). Equivalent to the reference for
            # 0 <= neg_slope <= 1 (asserted in the wrapper).
            h = jnp.maximum(h, neg_slope * h)
    out_ref[...] = h.astype(out_ref.dtype)


# ----------------------------------------------------------------------------
# Batch-tile selection: big tiles amortize per-step overhead; keep >= 2 grid
# steps when possible so v7x's two TensorCores both get work.
# ----------------------------------------------------------------------------
def _choose_tile_b(B, requested=512):
    if B <= 8:
        return B  # single tiny tile equal to the full batch (legal: == array dim)
    tb = min(requested, B)
    tb = max(8, (tb // 8) * 8)  # sublane aligned
    if pl.cdiv(B, tb) < 2:      # v7x megacore: ensure at least 2 parallel steps
        tb = max(8, (B // 2 // 8) * 8)
    return tb


# ----------------------------------------------------------------------------
# One-time parameter padding (done at init, NOT per forward call).
# Output dims (and the matching next-layer input dims) are zero-padded to a
# multiple of 128 lanes; the first layer's input dim stays at x_dim.
# Zero padding is exact: padded columns stay 0 through dot/bias/LeakyReLU.
# ----------------------------------------------------------------------------
def pad_params_for_kernel(params):
    padded = []
    prev_out = params[0][0].shape[0]  # first in-dim == x_dim, unpadded
    for li, (w, b) in enumerate(params):
        din, dout = w.shape
        in_pad = din if li == 0 else _pad_up(din)
        assert in_pad == prev_out, "layer dims must chain"
        out_pad = _pad_up(dout)
        wp = jnp.pad(w, ((0, in_pad - din), (0, out_pad - dout)))
        bp = jnp.pad(b, ((0, 0), (0, out_pad - b.shape[1])))
        padded.append((wp, bp))
        prev_out = out_pad
    return padded


# ----------------------------------------------------------------------------
# Fused forward: single pallas_call over a batch-tiled grid.
# ----------------------------------------------------------------------------
def mlp_forward_fused(x, padded_params, activate, *, y_dim, neg_slope=0.1,
                      tile_b=None):
    """x: [B, x_dim] f32; padded_params: output of pad_params_for_kernel."""
    assert 0.0 <= neg_slope <= 1.0, "max-form LeakyReLU requires slope in [0,1]"
    B, x_dim = x.shape
    assert padded_params[0][0].shape[0] == x_dim
    out_pad = padded_params[-1][0].shape[1]

    if tile_b is None:
        tile_b = _choose_tile_b(B)
    grid = pl.cdiv(B, tile_b)  # trailing partial block: OOB rows masked on write

    args = [x]
    in_specs = [pl.BlockSpec((tile_b, x_dim), lambda i: (i, 0))]
    for (w, b) in padded_params:
        args += [w, b]
        # Weights/biases resident across the batch grid (same block every step).
        in_specs += [
            pl.BlockSpec(w.shape, lambda i: (0, 0)),
            pl.BlockSpec(b.shape, lambda i: (0, 0)),
        ]

    kernel = functools.partial(
        _mlp_fused_kernel, activate=tuple(activate), neg_slope=neg_slope
    )
    out = pl.pallas_call(
        kernel,
        grid=(grid,),
        out_shape=jax.ShapeDtypeStruct((B, out_pad), jnp.float32),
        in_specs=in_specs,
        out_specs=pl.BlockSpec((tile_b, out_pad), lambda i: (i, 0)),
        compiler_params=pltpu.CompilerParams(
            dimension_semantics=("parallel",)  # batch tiles shard across TCs (v7x)
        ),
    )(*args)
    return out[:, :y_dim]


# ----------------------------------------------------------------------------
# Parameter construction (deterministic xavier_uniform weights, zero biases)
# ----------------------------------------------------------------------------
def xavier_uniform(key, fan_in, fan_out):
    gain = math.sqrt(2.0)
    bound = gain * math.sqrt(6.0 / (fan_in + fan_out))
    w = jax.random.uniform(
        key, (fan_in, fan_out), minval=-bound, maxval=bound, dtype=jnp.float32
    )
    b = jnp.zeros((1, fan_out), dtype=jnp.float32)
    return w, b


def build_params(key, x_dim, z_dims, dec_dims, y_dim):
    """Mirrors MLP.__init__: encoder [x_dim]+z_dims (last layer -> K, no act),
    decoder [K]+dec_dims+[y_dim] (last layer -> y_dim, no act)."""
    K = z_dims[-1]
    enc_dims = [x_dim] + list(z_dims)
    dec_num = [K] + list(dec_dims) + [y_dim]

    params, activate = [], []
    for i in range(len(enc_dims) - 2):          # encoder hidden: Linear + LeakyReLU
        key, sub = jax.random.split(key)
        params.append(xavier_uniform(sub, enc_dims[i], enc_dims[i + 1]))
        activate.append(True)
    key, sub = jax.random.split(key)            # encoder head -> K, no activation
    params.append(xavier_uniform(sub, enc_dims[-2], K))
    activate.append(False)
    for i in range(len(dec_num) - 2):           # decoder hidden: Linear + LeakyReLU
        key, sub = jax.random.split(key)
        params.append(xavier_uniform(sub, dec_num[i], dec_num[i + 1]))
        activate.append(True)
    key, sub = jax.random.split(key)            # decoder head -> y_dim, no activation
    params.append(xavier_uniform(sub, dec_num[-2], y_dim))
    activate.append(False)
    return params, activate


# ----------------------------------------------------------------------------
# Pure-JAX reference for correctness checking
# ----------------------------------------------------------------------------
def mlp_reference(x, params, activate, neg_slope=0.1):
    h = x
    for (w, b), act in zip(params, activate):
        h = h @ w + b
        if act:
            h = jnp.where(h > 0.0, h, neg_slope * h)
    return h


# ----------------------------------------------------------------------------
if __name__ == "__main__":
    # Shapes consistent with the module:
    #   x_dim=32, z_dims=[64, 32, 16] -> K=16, dec_dims=[32], y_dim=10
    x_dim, z_dims, dec_dims, y_dim = 32, [64, 32, 16], [32], 10

    root = jax.random.PRNGKey(0)
    k_params, k_x1, k_x2 = jax.random.split(root, 3)

    params, activate = build_params(k_params, x_dim, z_dims, dec_dims, y_dim)
    padded_params = pad_params_for_kernel(params)  # padded ONCE at init

    # batch=16 exercises multiple grid steps; batch=20 exercises the
    # ragged trailing tile (no host-side batch padding).
    for batch, kx in [(16, k_x1), (20, k_x2)]:
        x = jax.random.normal(kx, (batch, x_dim), dtype=jnp.float32)
        out = mlp_forward_fused(x, padded_params, activate, y_dim=y_dim,
                                neg_slope=0.1)
        out = jax.block_until_ready(out)
        ref = mlp_reference(x, params, activate, neg_slope=0.1)
        assert out.shape == (batch, y_dim)
        assert bool(jnp.all(jnp.isfinite(out)))
        assert bool(jnp.allclose(out, ref, rtol=1e-3, atol=1e-3))

    print("KERNEL_OK")
</pallas_src>

<mosaic_0001>
module attributes {stable_mosaic.version = 11 : i64} {
  func.func @_mlp_fused_kernel(%arg0: i32, %arg1: memref<8x32xf32, #tpu.memory_space<vmem>>, %arg2: memref<32x128xf32, #tpu.memory_space<vmem>>, %arg3: memref<1x128xf32, #tpu.memory_space<vmem>>, %arg4: memref<128x128xf32, #tpu.memory_space<vmem>>, %arg5: memref<1x128xf32, #tpu.memory_space<vmem>>, %arg6: memref<128x128xf32, #tpu.memory_space<vmem>>, %arg7: memref<1x128xf32, #tpu.memory_space<vmem>>, %arg8: memref<128x128xf32, #tpu.memory_space<vmem>>, %arg9: memref<1x128xf32, #tpu.memory_space<vmem>>, %arg10: memref<128x128xf32, #tpu.memory_space<vmem>>, %arg11: memref<1x128xf32, #tpu.memory_space<vmem>>, %arg12: memref<8x128xf32, #tpu.memory_space<vmem>>) attributes {dimension_semantics = [#tpu.dimension_semantics<parallel>], iteration_bounds = array<i64: 2>, scalar_prefetch = 0 : i64, scratch_operands = 0 : i64, tpu.core_type = #tpu.core_type<tc>, window_params = [{transform_indices = @transform_0, window_bounds = array<i64: 8, 32>}, {pipeline_mode = #tpu.pipeline_mode<synchronous>, transform_indices = @transform_1, window_bounds = array<i64: 32, 128>}, {pipeline_mode = #tpu.pipeline_mode<synchronous>, transform_indices = @transform_2, window_bounds = array<i64: 1, 128>}, {pipeline_mode = #tpu.pipeline_mode<synchronous>, transform_indices = @transform_3, window_bounds = array<i64: 128, 128>}, {pipeline_mode = #tpu.pipeline_mode<synchronous>, transform_indices = @transform_4, window_bounds = array<i64: 1, 128>}, {pipeline_mode = #tpu.pipeline_mode<synchronous>, transform_indices = @transform_5, window_bounds = array<i64: 128, 128>}, {pipeline_mode = #tpu.pipeline_mode<synchronous>, transform_indices = @transform_6, window_bounds = array<i64: 1, 128>}, {pipeline_mode = #tpu.pipeline_mode<synchronous>, transform_indices = @transform_7, window_bounds = array<i64: 128, 128>}, {pipeline_mode = #tpu.pipeline_mode<synchronous>, transform_indices = @transform_8, window_bounds = array<i64: 1, 128>}, {pipeline_mode = #tpu.pipeline_mode<synchronous>, transform_indices = @transform_9, window_bounds = array<i64: 128, 128>}, {pipeline_mode = #tpu.pipeline_mode<synchronous>, transform_indices = @transform_10, window_bounds = array<i64: 1, 128>}, {transform_indices = @transform_11, window_bounds = array<i64: 8, 128>}]} {
    %c0 = arith.constant 0 : index
    %c0_0 = arith.constant 0 : index
    %0 = vector.load %arg1[%c0, %c0_0] : memref<8x32xf32, #tpu.memory_space<vmem>>, vector<8x32xf32>
    %c0_1 = arith.constant 0 : index
    %c0_2 = arith.constant 0 : index
    %1 = vector.load %arg2[%c0_1, %c0_2] : memref<32x128xf32, #tpu.memory_space<vmem>>, vector<32x128xf32>
    %c0_3 = arith.constant 0 : index
    %c0_4 = arith.constant 0 : index
    %2 = vector.load %arg3[%c0_3, %c0_4] : memref<1x128xf32, #tpu.memory_space<vmem>>, vector<1x128xf32>
    %cst = arith.constant dense<0.000000e+00> : vector<8x128xf32>
    %3 = tpu.matmul %0, %1, %cst {dimension_numbers = #tpu.dot_dimension_numbers<[1], [0], [0], [1], [0, 0, 1, 1], [], []>} : vector<8x32xf32>, vector<32x128xf32>, vector<8x128xf32> -> vector<8x128xf32>
    %4 = vector.broadcast %2 : vector<1x128xf32> to vector<8x128xf32>
    %5 = arith.addf %3, %4 : vector<8x128xf32>
    %cst_5 = arith.constant 1.000000e-01 : f32
    %6 = vector.broadcast %cst_5 : f32 to vector<8x128xf32>
    %7 = arith.mulf %6, %5 : vector<8x128xf32>
    %8 = arith.maximumf %5, %7 : vector<8x128xf32>
    %c0_6 = arith.constant 0 : index
    %c0_7 = arith.constant 0 : index
    %9 = vector.load %arg4[%c0_6, %c0_7] : memref<128x128xf32, #tpu.memory_space<vmem>>, vector<128x128xf32>
    %c0_8 = arith.constant 0 : index
    %c0_9 = arith.constant 0 : index
    %10 = vector.load %arg5[%c0_8, %c0_9] : memref<1x128xf32, #tpu.memory_space<vmem>>, vector<1x128xf32>
    %cst_10 = arith.constant dense<0.000000e+00> : vector<8x128xf32>
    %11 = tpu.matmul %8, %9, %cst_10 {dimension_numbers = #tpu.dot_dimension_numbers<[1], [0], [0], [1], [0, 0, 1, 1], [], []>} : vector<8x128xf32>, vector<128x128xf32>, vector<8x128xf32> -> vector<8x128xf32>
    %12 = vector.broadcast %10 : vector<1x128xf32> to vector<8x128xf32>
    %13 = arith.addf %11, %12 : vector<8x128xf32>
    %cst_11 = arith.constant 1.000000e-01 : f32
    %14 = vector.broadcast %cst_11 : f32 to vector<8x128xf32>
    %15 = arith.mulf %14, %13 : vector<8x128xf32>
    %16 = arith.maximumf %13, %15 : vector<8x128xf32>
    %c0_12 = arith.constant 0 : index
    %c0_13 = arith.constant 0 : index
    %17 = vector.load %arg6[%c0_12, %c0_13] : memref<128x128xf32, #tpu.memory_space<vmem>>, vector<128x128xf32>
    %c0_14 = arith.constant 0 : index
    %c0_15 = arith.constant 0 : index
    %18 = vector.load %arg7[%c0_14, %c0_15] : memref<1x128xf32, #tpu.memory_space<vmem>>, vector<1x128xf32>
    %cst_16 = arith.constant dense<0.000000e+00> : vector<8x128xf32>
    %19 = tpu.matmul %16, %17, %cst_16 {dimension_numbers = #tpu.dot_dimension_numbers<[1], [0], [0], [1], [0, 0, 1, 1], [], []>} : vector<8x128xf32>, vector<128x128xf32>, vector<8x128xf32> -> vector<8x128xf32>
    %20 = vector.broadcast %18 : vector<1x128xf32> to vector<8x128xf32>
    %21 = arith.addf %19, %20 : vector<8x128xf32>
    %c0_17 = arith.constant 0 : index
    %c0_18 = arith.constant 0 : index
    %22 = vector.load %arg8[%c0_17, %c0_18] : memref<128x128xf32, #tpu.memory_space<vmem>>, vector<128x128xf32>
    %c0_19 = arith.constant 0 : index
    %c0_20 = arith.constant 0 : index
    %23 = vector.load %arg9[%c0_19, %c0_20] : memref<1x128xf32, #tpu.memory_space<vmem>>, vector<1x128xf32>
    %cst_21 = arith.constant dense<0.000000e+00> : vector<8x128xf32>
    %24 = tpu.matmul %21, %22, %cst_21 {dimension_numbers = #tpu.dot_dimension_numbers<[1], [0], [0], [1], [0, 0, 1, 1], [], []>} : vector<8x128xf32>, vector<128x128xf32>, vector<8x128xf32> -> vector<8x128xf32>
    %25 = vector.broadcast %23 : vector<1x128xf32> to vector<8x128xf32>
    %26 = arith.addf %24, %25 : vector<8x128xf32>
    %cst_22 = arith.constant 1.000000e-01 : f32
    %27 = vector.broadcast %cst_22 : f32 to vector<8x128xf32>
    %28 = arith.mulf %27, %26 : vector<8x128xf32>
    %29 = arith.maximumf %26, %28 : vector<8x128xf32>
    %c0_23 = arith.constant 0 : index
    %c0_24 = arith.constant 0 : index
    %30 = vector.load %arg10[%c0_23, %c0_24] : memref<128x128xf32, #tpu.memory_space<vmem>>, vector<128x128xf32>
    %c0_25 = arith.constant 0 : index
    %c0_26 = arith.constant 0 : index
    %31 = vector.load %arg11[%c0_25, %c0_26] : memref<1x128xf32, #tpu.memory_space<vmem>>, vector<1x128xf32>
    %cst_27 = arith.constant dense<0.000000e+00> : vector<8x128xf32>
    %32 = tpu.matmul %29, %30, %cst_27 {dimension_numbers = #tpu.dot_dimension_numbers<[1], [0], [0], [1], [0, 0, 1, 1], [], []>} : vector<8x128xf32>, vector<128x128xf32>, vector<8x128xf32> -> vector<8x128xf32>
    %33 = vector.broadcast %31 : vector<1x128xf32> to vector<8x128xf32>
    %34 = arith.addf %32, %33 : vector<8x128xf32>
    %c0_28 = arith.constant 0 : index
    %c0_29 = arith.constant 0 : index
    %35 = vector.load %arg12[%c0_28, %c0_29] : memref<8x128xf32, #tpu.memory_space<vmem>>, vector<8x128xf32>
    tpu.vector_store %arg12[%c0_28, %c0_29], %34 {strides = array<i32>} : memref<8x128xf32, #tpu.memory_space<vmem>>, vector<8x128xf32>,
    return
  }
  func.func @transform_0(%arg0: i32) -> (i32, i32) {
    %c0_i32 = arith.constant 0 : i32
    %c0_i32_0 = arith.constant 0 : i32
    return %arg0, %c0_i32 : i32, i32
  }
  func.func @transform_1(%arg0: i32) -> (i32, i32) {
    %c0_i32 = arith.constant 0 : i32
    %c0_i32_0 = arith.constant 0 : i32
    %c0_i32_1 = arith.constant 0 : i32
    return %c0_i32, %c0_i32_0 : i32, i32
  }
  func.func @transform_2(%arg0: i32) -> (i32, i32) {
    %c0_i32 = arith.constant 0 : i32
    %c0_i32_0 = arith.constant 0 : i32
    %c0_i32_1 = arith.constant 0 : i32
    return %c0_i32, %c0_i32_0 : i32, i32
  }
  func.func @transform_3(%arg0: i32) -> (i32, i32) {
    %c0_i32 = arith.constant 0 : i32
    %c0_i32_0 = arith.constant 0 : i32
    %c0_i32_1 = arith.constant 0 : i32
    return %c0_i32, %c0_i32_0 : i32, i32
  }
  func.func @transform_4(%arg0: i32) -> (i32, i32) {
    %c0_i32 = arith.constant 0 : i32
    %c0_i32_0 = arith.constant 0 : i32
    %c0_i32_1 = arith.constant 0 : i32
    return %c0_i32, %c0_i32_0 : i32, i32
  }
  func.func @transform_5(%arg0: i32) -> (i32, i32) {
    %c0_i32 = arith.constant 0 : i32
    %c0_i32_0 = arith.constant 0 : i32
    %c0_i32_1 = arith.constant 0 : i32
    return %c0_i32, %c0_i32_0 : i32, i32
  }
  func.func @transform_6(%arg0: i32) -> (i32, i32) {
    %c0_i32 = arith.constant 0 : i32
    %c0_i32_0 = arith.constant 0 : i32
    %c0_i32_1 = arith.constant 0 : i32
    return %c0_i32, %c0_i32_0 : i32, i32
  }
  func.func @transform_7(%arg0: i32) -> (i32, i32) {
    %c0_i32 = arith.constant 0 : i32
    %c0_i32_0 = arith.constant 0 : i32
    %c0_i32_1 = arith.constant 0 : i32
    return %c0_i32, %c0_i32_0 : i32, i32
  }
  func.func @transform_8(%arg0: i32) -> (i32, i32) {
    %c0_i32 = arith.constant 0 : i32
    %c0_i32_0 = arith.constant 0 : i32
    %c0_i32_1 = arith.constant 0 : i32
    return %c0_i32, %c0_i32_0 : i32, i32
  }
  func.func @transform_9(%arg0: i32) -> (i32, i32) {
    %c0_i32 = arith.constant 0 : i32
    %c0_i32_0 = arith.constant 0 : i32
    %c0_i32_1 = arith.constant 0 : i32
    return %c0_i32, %c0_i32_0 : i32, i32
  }
  func.func @transform_10(%arg0: i32) -> (i32, i32) {
    %c0_i32 = arith.constant 0 : i32
    %c0_i32_0 = arith.constant 0 : i32
    %c0_i32_1 = arith.constant 0 : i32
    return %c0_i32, %c0_i32_0 : i32, i32
  }
  func.func @transform_11(%arg0: i32) -> (i32, i32) {
    %c0_i32 = arith.constant 0 : i32
    %c0_i32_0 = arith.constant 0 : i32
    return %arg0, %c0_i32 : i32, i32
  }
}

</mosaic_0001>

<bundles_post_ra>
// kernel: tpu_custom_call.1
= control target key start
LH: loop header
LB: loop body
LE: loop exit
PB: predicated region body
PF: predicated region fallthrough
CT: control target
= control target key end

     0   :  { %s2058_s0 = inlined_call_operand.hbm [shape: f32[16,32], index: 0, kind: input, shape index: {}]   ;;  %s2059_s1 = inlined_call_operand.hbm [shape: f32[32,128], index: 1, kind: input, shape index: {}]   ;;  %s2060_s2 = inlined_call_operand.vmem [shape: f32[1,128], index: 2, kind: input, shape index: {}]   ;;  %s2061_s3 = inlined_call_operand.hbm [shape: f32[128,128], index: 3, kind: input, shape index: {}]   ;;  %s2062_s4 = inlined_call_operand.vmem [shape: f32[1,128], index: 4, kind: input, shape index: {}]   ;;  %s2063_s5 = inlined_call_operand.hbm [shape: f32[128,128], index: 5, kind: input, shape index: {}]   ;;  %s2064_s6 = inlined_call_operand.vmem [shape: f32[1,128], index: 6, kind: input, shape index: {}]   ;;  %s2065_s7 = inlined_call_operand.hbm [shape: f32[128,128], index: 7, kind: input, shape index: {}]   ;;  %s2066_s8 = inlined_call_operand.vmem [shape: f32[1,128], index: 8, kind: input, shape index: {}]   ;;  %s2067_s9 = inlined_call_operand.hbm [shape: f32[128,128], index: 9, kind: input, shape index: {}]   ;;  %s2068_s10 = inlined_call_operand.vmem [shape: f32[1,128], index: 10, kind: input, shape index: {}]   ;;  %s2069_s11 = inlined_call_operand.hbm [shape: f32[16,128], index: 11, kind: output, shape index: {}]  }
   0x1   :  { %2074 = sst [smem:[#allocation20_spill]] %s2059_s1 }
   0x2   :  { %2075 = sst [smem:[#allocation21_spill]] %s2061_s3 }
   0x3   :  { %2076 = sst [smem:[#allocation22_spill]] %s2063_s5 }
   0x4   :  { %2077 = sst [smem:[#allocation23_spill]] %s2065_s7 }
   0x5   :  { %2078 = sst [smem:[#allocation24_spill]] %s2067_s9 }
   0x6   :  { %16 = vsyncpa [#allocation3], 0 }
   0x7   :  { %18 = vsyncpa [#allocation3 + $0x1], 0 }
   0x8   :  { %19 = vsyncpa [#allocation6], 0 }
   0x9   :  { %20 = vsyncpa [#allocation9], 0 }
   0xa   :  { %21 = vsyncpa [#allocation12], 0 }
   0xb   :  { %22 = vsyncpa [#allocation4], 0 }
   0xc   :  { %24 = vsyncpa [#allocation4 + $0x1], 0  ;;  %s1732_s17 = smov 0   ;;  %s1734_s18 = smov 0  }
   0xd   :  { %s1736_s19 = smov 0   ;;  %s1738_s20 = smov 0  }
   0xe LB: > { %s1661_s21 = smov [#allocation5]   ;;  %s1753_s23 = sadd.s32 4294967295, %s1659_s20   ;;  %s1659_s20 = sphi %s1738_s20, %s2107_s20   ;;  %s1655_s19 = sphi %s1736_s19, %s2106_s19   ;;  %s1651_s18 = sphi %s1734_s18, %s2105_s18   ;;  %s1647_s17 = sphi %s1732_s17, %s2104_s17  }
   0xf   : > { %s309_s22 = sshll.u32 %s1661_s21, 4  ;;  %p1073_p0 = scmp.ge.s32.totalorder %s1659_s20, 1  ;;  %s310_s22 = int_to_ptr.vmem [resolvable:$true] %s309_s22 }
  0x10   : > { %p2070_p1 = scmp.eq.s32.totalorder %s1753_s23, 0  ;;  %p297_p2 = scmp.lt.s32.totalorder %s1659_s20, 3 }
  0x11   : > { %s1662_s25 = smov [#allocation8]   ;;  %s1663_s28 = smov [#allocation7]  }
  0x12   : > { %p1758_p3 = pnand %p1073_p0, %p297_p2  ;;  %s341_s26 = sshll.u32 %s1662_s25, 4  ;;  %s1771_s26 = int_to_ptr.vmem [resolvable:$true] %s341_s26 }
  0x13   : > { %s325_s29 = sshll.u32 %s1663_s28, 4  ;;  %s1436_s12 = scalar_lea.vmem %s310_s22, 512  ;;  %s1773_s29 = int_to_ptr.vmem [resolvable:$true] %s325_s29 }
  0x14   : > { %s2079_s24 = scalar_select %p1758_p3, 1, 0 }
  0x15   : > { %p1348_p5 = pneg %p1758_p3  ;;  %p1437_p8 = scmp.ne.s32.totalorder %s310_s22, %s1436_s12 }
  0x16   : > { %p1444_p11 = scmp.lt.s32.totalorder %s310_s22, %s310_s22  ;;  %p1445_p12 = scmp.lt.s32.totalorder %s1436_s12, %s1436_s12 }
  0x17   : > { %p1767_p6 = pnand %p1348_p5, %p2070_p1 }
  0x18   : > { %p1446_p13 = por %p1445_p12, %p1444_p11 }
  0x19   : > { %p1777_p7 = pneg %p1767_p6 }
  0x1b   : > { %p1439_p9 = pnand %p1437_p8, %p1777_p7 }
  0x1d   : > { %p1440_p10 = pneg %p1439_p9 }
  0x1f   : > { %p1447_p0 = pnand %p1446_p13, %p1440_p10 }
  0x21   : > { %1450 = shalt.err (!%p1447_p0)
}
  0x22   : > { %s1664_s13 = smov 128   ;;  %s1665_s14 = smov 8  }
  0x23   : > { %s2082_s1 = sld [smem:[#allocation20_spill]]  ;;  %s1462_s21 = scalar_lea.vmem %s1771_s26, 2048 }
  0x24   : > { %p1463_p2 = scmp.ne.s32.totalorder %s1771_s26, %s1462_s21  ;;  %p1470_p9 = scmp.lt.s32.totalorder %s1771_s26, %s1771_s26 }
  0x25   : > { %p1471_p10 = scmp.lt.s32.totalorder %s1462_s21, %s1462_s21 }
  0x26   : > { %p1465_p5 = pnand %p1463_p2, %p1777_p7 }
  0x27   : > { %p1472_p11 = por %p1471_p10, %p1470_p9 }
  0x28   : > { %p1466_p8 = pneg %p1465_p5 }
  0x29   : > { %1351 = dma.hbm_to_vmem [thread:$0]  (!%p1767_p6), %s2082_s1, 512, %s310_s22, [#allocation6], %s1664_s13, %s1664_s13, %s1665_s14  }
  0x2a   : > { %p1473_p12 = pnand %p1472_p11, %p1466_p8 }
  0x2c   : > { %1476 = shalt.err (!%p1473_p12)
}
  0x2d   : > { %s2083_s5 = sld [smem:[#allocation22_spill]]  ;;  %s1488_s22 = scalar_lea.vmem %s1773_s29, 2048 }
  0x2e   : > { %p1489_p13 = scmp.ne.s32.totalorder %s1773_s29, %s1488_s22  ;;  %p1496_p5 = scmp.lt.s32.totalorder %s1773_s29, %s1773_s29 }
  0x2f   : > { %p1497_p8 = scmp.lt.s32.totalorder %s1488_s22, %s1488_s22 }
  0x30   : > { %p1491_p0 = pnand %p1489_p13, %p1777_p7 }
  0x31   : > { %p1498_p9 = por %p1497_p8, %p1496_p5 }
  0x32   : > { %p1492_p2 = pneg %p1491_p0 }
  0x33   : > { %1357 = dma.hbm_to_vmem [thread:$0]  (!%p1767_p6), %s2083_s5, 2048, %s1771_s26, [#allocation9], %s1664_s13, %s1664_s13, %s1665_s14  }
  0x34   : > { %p1499_p10 = pnand %p1498_p9, %p1492_p2 }
  0x36   : > { %1502 = shalt.err (!%p1499_p10)
}
  0x37   : > { %s2084_s3 = sld [smem:[#allocation21_spill]]  ;;  %s1666_s26 = smov [#allocation10]  }
  0x38   : > { %s357_s16 = sshll.u32 %s1666_s26, 4  ;;  %s1667_s21 = smov [#allocation11]   ;;  %s358_s16 = int_to_ptr.vmem [resolvable:$true] %s357_s16 }
  0x39   : > { %s373_s25 = sshll.u32 %s1667_s21, 4  ;;  %s1514_s28 = scalar_lea.vmem %s358_s16, 2048  ;;  %s374_s25 = int_to_ptr.vmem [resolvable:$true] %s373_s25 }
  0x3a   : > { %p1515_p11 = scmp.ne.s32.totalorder %s358_s16, %s1514_s28  ;;  %p1522_p0 = scmp.lt.s32.totalorder %s358_s16, %s358_s16 }
  0x3b   : > { %p1523_p2 = scmp.lt.s32.totalorder %s1514_s28, %s1514_s28 }
  0x3c   : > { %p1517_p12 = pnand %p1515_p11, %p1777_p7 }
  0x3d   : > { %1354 = dma.hbm_to_vmem [thread:$0]  (!%p1767_p6), %s2084_s3, 2048, %s1773_s29, [#allocation6], %s1664_s13, %s1664_s13, %s1665_s14  }
  0x3e   : > { %p1518_p13 = pneg %p1517_p12  ;;  %p1524_p5 = por %p1523_p2, %p1522_p0 }
  0x40   : > { %p1525_p8 = pnand %p1524_p5, %p1518_p13 }
  0x42   : > { %1528 = shalt.err (!%p1525_p8)
}
  0x43   : > { %s2085_s7 = sld [smem:[#allocation23_spill]]  ;;  %s1540_s12 = scalar_lea.vmem %s374_s25, 2048 }
  0x44   : > { %p1541_p9 = scmp.ne.s32.totalorder %s374_s25, %s1540_s12  ;;  %p1548_p12 = scmp.lt.s32.totalorder %s374_s25, %s374_s25 }
  0x45   : > { %p1549_p0 = scmp.lt.s32.totalorder %s1540_s12, %s1540_s12 }
  0x46   : > { %p1543_p10 = pnand %p1541_p9, %p1777_p7 }
  0x47   : > { %p1550_p13 = por %p1549_p0, %p1548_p12 }
  0x48   : > { %p1544_p11 = pneg %p1543_p10 }
  0x49   : > { %1360 = dma.hbm_to_vmem [thread:$0]  (!%p1767_p6), %s2085_s7, 2048, %s358_s16, [#allocation9], %s1664_s13, %s1664_s13, %s1665_s14  }
  0x4a   : > { %p1551_p2 = pnand %p1550_p13, %p1544_p11 }
  0x4c   : > { %1554 = shalt.err (!%p1551_p2)
}
  0x4d   : > { %s2086_s9 = sld [smem:[#allocation24_spill]]  ;;  %s1072_s27 = sadd.s32 4294967294, %s1659_s20  }
  0x4e   : > { %s1843_s30 = sadd.s32 1, %s1659_s20   ;;  %s37_s16 = sadd.s32 1, %s1655_s19 }
  0x4f   : > { %s34_s21 = ssub.s32 %s1659_s20, %s1843_s30  ;;  %p44_p7 = scmp.ne.s32.totalorder %s1655_s19, %s1651_s18 }
  0x50   : > { %p35_p5 = scmp.eq.s32.totalorder %s34_s21, 0  ;;  %p45_p8 = scmp.eq.s32.totalorder %s1659_s20, 0 }
  0x51   : > { %p50_p9 = scmp.ne.s32.totalorder %s1651_s18, %s1647_s17  ;;  %p284_p10 = scmp.eq.s32.totalorder %s1753_s23, 1 }
  0x52   : > { %s1855_s28 = scalar_select %p35_p5, %s1655_s19, %s37_s16  }
  0x53   : > { %1363 = dma.hbm_to_vmem [thread:$0]  (!%p1767_p6), %s2086_s9, 2048, %s374_s25, [#allocation12], %s1664_s13, %s1664_s13, %s1665_s14  }
  0x54   : > { %2087 = sst [smem:[#allocation19_spill]] %s1855_s28  ;;  %p46_p11 = por %p45_p8, %p44_p7 }
  0x55   : > { %p1859_p12 = por %p2070_p1, %p50_p9  ;;  %p1863_p6 = por %p284_p10, %p44_p7 }
  0x56   : > { %p290_p0 = scmp.eq.s32.totalorder %s1072_s27, 1  ;;  %p1377_p13 = scmp.lt.s32.totalorder %s1659_s20, 2 }
  0x57   : > { %s2088_s29 = scalar_select %p1859_p12, 1, 0 }
  0x58   : > { %s2089_s13 = scalar_select %p1863_p6, 1, 0 }
  0x59   : > { %s390_s14 = sand.u32 1, %s1655_s19   ;;  %p1869_p2 = por %p290_p0, %p50_p9 }
  0x5a   : > { %s1080_s22 = sshll.u32 %s390_s14, 3  ;;  %s1081_s12 = sshll.u32 %s1659_s20, 7 }
  0x5b   : > { %s2090_s25 = scalar_select %p1869_p2, 1, 0 }
  0x5c   : > { %s1877_s16 = scalar_lea.hbm %s2058_s0, %s1081_s12  ;;  %s394_s21 = scalar_lea.vmem [#allocation2], %s1080_s22 }
  0x5d   : > { %s401_s1 = sshll.u32 %s394_s21, 4  ;;  %p1879_p7 = pnand %p1377_p13, %p46_p11  ;;  %s402_s1 = int_to_ptr.vmem [resolvable:$true] %s401_s1 }
  0x5e   : > { %s391_s3 = scalar_lea.sflag [#allocation3], %s390_s14  ;;  %s1555_s5 = scalar_lea.hbm %s1877_s16, 128 }
  0x5f   : > { %p1556_p5 = scmp.ne.s32.totalorder %s1877_s16, %s1555_s5  ;;  %p1557_p8 = pneg %p1879_p7 }
  0x60   : > { %s1560_s26 = scalar_lea.hbm %s2058_s0, 256  ;;  %p1561_p11 = scmp.lt.s32.totalorder %s1877_s16, %s2058_s0 }
  0x61   : > { %p1558_p9 = pnand %p1557_p8, %p1556_p5  ;;  %p1562_p0 = scmp.lt.s32.totalorder %s1560_s26, %s1555_s5 }
  0x63   : > { %p1559_p10 = pneg %p1558_p9  ;;  %p1563_p13 = por %p1562_p0, %p1561_p11 }
  0x65   : > { %p1564_p4 = pnand %p1563_p13, %p1559_p10 }
  0x67   : > { %1567 = shalt.err (!%p1564_p4)
}
  0x68   : > { %s1568_s21 = scalar_lea.vmem %s402_s1, 128  ;;  %s1668_s14 = smov [#allocation2]  }
  0x69   : > { %p1569_p1 = scmp.ne.s32.totalorder %s402_s1, %s1568_s21  ;;  %s1573_s9 = sshll.u32 %s1668_s14, 4  ;;  %s1574_s9 = int_to_ptr.vmem [resolvable:$false] %s1573_s9 }
  0x6a   : > { %s1575_s28 = scalar_lea.vmem %s1574_s9, 256  ;;  %p1576_p5 = scmp.lt.s32.totalorder %s402_s1, %s1574_s9 }
  0x6b   : > { %p1571_p2 = pnand %p1569_p1, %p1557_p8  ;;  %p1577_p9 = scmp.lt.s32.totalorder %s1575_s28, %s1568_s21 }
  0x6d   : > { %p1572_p6 = pneg %p1571_p2  ;;  %p1578_p12 = por %p1577_p9, %p1576_p5 }
  0x6f   : > { %p1579_p3 = pnand %p1578_p12, %p1572_p6 }
  0x71   : > { %1582 = shalt.err (!%p1579_p3)
}
  0x72   : > { %1367 = dma.hbm_to_vmem [thread:$0]  (!%p1879_p7), %s1877_s16, 128, %s402_s1, %s391_s3  }
  0x73   : > { %p2092_p10 = scmp.ne.s32.totalorder %s2079_s24, 0 }
  0x74   : > { %s1900_s5 = sand.u32 (!%p2092_p10), 1, %s1651_s18   ;;  %p2093_p1 = scmp.ne.s32.totalorder (!%p2092_p10), %s2088_s29, 0 }
  0x75   : > { %410 = sbr.rel (%p2092_p10) target bundleno = 1142 (0x476), region = 64  ;;  %s1083_s7 = sshll.u32 (!%p2092_p10), %s1900_s5, 3 }
  0x76   : > { %s413_s9 = scalar_lea.sflag (!%p2092_p10), [#allocation3], %s1900_s5  ;;  %s416_s28 = scalar_lea.vmem (!%p2092_p10), [#allocation2], %s1083_s7 }
  0x7a   : > { %1626 = dma.done.wait (%p2093_p1), %s413_s9, 128  }
  0x7b   : > { %1628 = vsyncadd (%p2093_p1), %s413_s9, 4294967168  ;;  %p2094_p3 = scmp.eq.s32.totalorder %s1753_s23, 0 }
  0x7d   : > { %1630 = dma.done.wait (%p2094_p3), [#allocation6], 2560   ;;  %p2095_p4 = pmov %p2094_p3 }
  0x7e   : > { %p2096_p12 = pmov %p2094_p3 }
  0x7f   : > { %1632 = vsyncadd (%p2095_p4), [#allocation6], 4294964736 }
  0x80   : > { %1634 = dma.done.wait (%p2096_p12), [#allocation9], 4096   ;;  %p2097_p6 = pmov %p2094_p3 }
  0x81   : > { %p2098_p2 = pmov %p2094_p3 }
  0x82   : > { %1636 = vsyncadd (%p2097_p6), [#allocation9], 4294963200 }
  0x83   : > { %1638 = dma.done.wait (%p2098_p2), [#allocation12], 2048   ;;  %p2099_p7 = pmov %p2098_p2 }
  0x84   : > { %v1669_v0 = vmov 0.0   ;;  %vm1670_vm0 = vmmov 0   ;;  %v479_v1 = vld [vmem:[#allocation5 + $0x18] sm:$0xff]  ;;  %v478_v2 = vld [vmem:[#allocation5 + $0x10] sm:$0xff]  ;;  %v477_v4 = vld [vmem:[#allocation5 + $0x8] sm:$0xff]  ;;  %vm487_vm1 = vcmask 261120  }
  0x85   : > { %1640 = vsyncadd (%p2099_p7), [#allocation12], 4294965248  ;;  %1173 = vmatprep.subr.mxu0 %v1669_v0  ;;  %1181 = vmatprep.mubr.msk.f32.mxu0 %vm1670_vm0, %v1669_v0  ;;  %v578_v3 = vld [vmem:[#allocation7 + $0x78] sm:$0xff]  ;;  %v577_v5 = vld [vmem:[#allocation7 + $0x70] sm:$0xff]  ;;  %s1097_s21 = sshll.u32 %s1753_s23, 7  ;;  %s474_s14 = scalar_lea.vmem [#allocation13], %s1083_s7 }
  0x86   : > { %1184 = vmatprep.subr.mxu1 %v1669_v0  ;;  %1216 = vmatprep.mubr.msk.f32.mxu1 %vm1670_vm0, %v1669_v0  ;;  %v576_v6 = vld [vmem:[#allocation7 + $0x68] sm:$0xff]  ;;  %v476_v7 = vld [vmem:[#allocation5] sm:$0xff]  ;;  %v475_v8 = vld [vmem:[%s416_s28] sm:$0xff]  ;;  %s954_s9 = sshll.u32 %s474_s14, 4  ;;  %s2021_s3 = scalar_lea.hbm %s2069_s11, %s1097_s21  ;;  %s955_s9 = int_to_ptr.vmem [resolvable:$true] %s954_s9 }
  0x87   : > { %1174 = vmatpush3.msra.mxu0 %v479_v1  ;;  %1185 = vmatpush3.msra.mxu1 %v578_v3  ;;  %v575_v9 = vld [vmem:[#allocation7 + $0x60] sm:$0xff]  ;;  %v574_v10 = vld [vmem:[#allocation7 + $0x58] sm:$0xff]  ;;  %v573_v11 = vld [vmem:[#allocation7 + $0x50] sm:$0xff]  ;;  %s941_s24 = scalar_lea.sflag [#allocation4], %s1900_s5  ;;  %s1583_s29 = scalar_lea.vmem %s955_s9, 128 }
  0x88   : > { %1175 = vmatprep.subr.mxu0 %v1669_v0  ;;  %1186 = vmatprep.subr.mxu1 %v1669_v0  ;;  %v572_v12 = vld [vmem:[#allocation7 + $0x48] sm:$0xff]  ;;  %v571_v13 = vld [vmem:[#allocation7 + $0x40] sm:$0xff]  ;;  %v570_v14 = vld [vmem:[#allocation7 + $0x38] sm:$0xff]  ;;  %p1584_p8 = scmp.ne.s32.totalorder %s955_s9, %s1583_s29  ;;  %p2100_p11 = scmp.ne.s32.totalorder %s2089_s13, 0 }
  0x89   : > { %1176 = vmatpush3.msra.mxu0 %v478_v2  ;;  %1187 = vmatpush3.msra.mxu1 %v577_v5  ;;  %v569_v15 = vld [vmem:[#allocation7 + $0x30] sm:$0xff]  ;;  %v568_v16 = vld [vmem:[#allocation7 + $0x28] sm:$0xff]  ;;  %v567_v17 = vld [vmem:[#allocation7 + $0x20] sm:$0xff]  ;;  %s1671_s23 = smov [#allocation13]  }
  0x8a   : > { %1177 = vmatprep.subr.mxu0 %v1669_v0  ;;  %1188 = vmatprep.subr.mxu1 %v1669_v0  ;;  %v566_v18 = vld [vmem:[#allocation7 + $0x18] sm:$0xff]  ;;  %v565_v19 = vld [vmem:[#allocation7 + $0x10] sm:$0xff]  ;;  %v564_v20 = vld [vmem:[#allocation7 + $0x8] sm:$0xff]  ;;  %p1585_p0 = pnand %p1584_p8, %p2100_p11  ;;  %s1587_s16 = sshll.u32 %s1671_s23, 4  ;;  %s1588_s16 = int_to_ptr.vmem [resolvable:$false] %s1587_s16 }
  0x8b   : > { %1178 = vmatpush3.msra.mxu0 %v477_v4  ;;  %1189 = vmatpush3.msra.mxu1 %v576_v6  ;;  %v563_v21 = vld [vmem:[#allocation7] sm:$0xff]  ;;  %v673_v22 = vld [vmem:[#allocation8 + $0x78] sm:$0xff]  ;;  %v672_v23 = vld [vmem:[#allocation8 + $0x70] sm:$0xff]  ;;  %s1589_s7 = scalar_lea.vmem %s1588_s16, 256  ;;  %p1590_p5 = scmp.lt.s32.totalorder %s955_s9, %s1588_s16 }
  0x8c   : > { %1179 = vmatprep.subr.mxu0 %v1669_v0  ;;  %1190 = vmatprep.subr.mxu1 %v1669_v0  ;;  %v671_v24 = vld [vmem:[#allocation8 + $0x68] sm:$0xff]  ;;  %v670_v25 = vld [vmem:[#allocation8 + $0x60] sm:$0xff]  ;;  %v669_v26 = vld [vmem:[#allocation8 + $0x58] sm:$0xff]  ;;  %p1586_p13 = pneg %p1585_p0  ;;  %p1591_p9 = scmp.lt.s32.totalorder %s1589_s7, %s1583_s29 }
  0x8d   : > { %1180 = vmatpush3.msra.mxu0 %v476_v7  ;;  %1191 = vmatpush3.msra.mxu1 %v575_v9  ;;  %v668_v27 = vld [vmem:[#allocation8 + $0x50] sm:$0xff]  ;;  %v667_v28 = vld [vmem:[#allocation8 + $0x48] sm:$0xff]  ;;  %v666_v29 = vld [vmem:[#allocation8 + $0x40] sm:$0xff] }
  0x8e   : > { %1182 = vmatmul.mubr.msk.f32.vlgmr.msra.gmra.mxu0 %vm487_vm1, %v475_v8  ;;  %1192 = vmatprep.subr.mxu1 %v1669_v0  ;;  %v665_v30 = vld [vmem:[#allocation8 + $0x38] sm:$0xff]  ;;  %v664_v31 = vld [vmem:[#allocation8 + $0x30] sm:$0xff]  ;;  %v663_v32 = vld [vmem:[#allocation8 + $0x28] sm:$0xff]  ;;  %p1592_p10 = por %p1591_p9, %p1590_p5 }
  0x8f   : > { %1219 = vmatprep.subr.mxu0 %v1669_v0  ;;  %1193 = vmatpush3.msra.mxu1 %v574_v10  ;;  %v662_v33 = vld [vmem:[#allocation8 + $0x20] sm:$0xff]  ;;  %v1090_v34 = vld [vmem:[%s2060_s2] ss:$0 sm:$0xff]  ;;  %v661_v40 = vld [vmem:[#allocation8 + $0x18] sm:$0xff] }
  0x90   : > { %1251 = vmatprep.mubr.msk.f32.mxu0 %vm1670_vm0, %v1669_v0  ;;  %1194 = vmatprep.subr.mxu1 %v1669_v0  ;;  %v660_v41 = vld [vmem:[#allocation8 + $0x10] sm:$0xff]  ;;  %v659_v42 = vld [vmem:[#allocation8 + $0x8] sm:$0xff]  ;;  %v658_v43 = vld [vmem:[#allocation8] sm:$0xff]  ;;  %p1593_p1 = pnand %p1592_p10, %p1586_p13 }
  0x91   : > { %1195 = vmatpush3.msra.mxu1 %v573_v11  ;;  %1220 = vmatpush3.msra.mxu0 %v673_v22  ;;  %v766_v44 = vld [vmem:[#allocation10 + $0x78] sm:$0xff]  ;;  %v765_v45 = vld [vmem:[#allocation10 + $0x70] sm:$0xff]  ;;  %v764_v46 = vld [vmem:[#allocation10 + $0x68] sm:$0xff] }
  0x92   : > { %1196 = vmatprep.subr.mxu1 %v1669_v0  ;;  %1221 = vmatprep.subr.mxu0 %v1669_v0  ;;  %v763_v47 = vld [vmem:[#allocation10 + $0x60] sm:$0xff]  ;;  %v762_v48 = vld [vmem:[#allocation10 + $0x58] sm:$0xff]  ;;  %v761_v49 = vld [vmem:[#allocation10 + $0x50] sm:$0xff] }
  0x93   : > { %1197 = vmatpush3.msra.mxu1 %v572_v12  ;;  %1222 = vmatpush3.msra.mxu0 %v672_v23  ;;  %v760_v50 = vld [vmem:[#allocation10 + $0x48] sm:$0xff]  ;;  %v759_v51 = vld [vmem:[#allocation10 + $0x40] sm:$0xff]  ;;  %v758_v52 = vld [vmem:[#allocation10 + $0x38] sm:$0xff] }
  0x94   : > { %1198 = vmatprep.subr.mxu1 %v1669_v0  ;;  %1223 = vmatprep.subr.mxu0 %v1669_v0  ;;  %v757_v53 = vld [vmem:[#allocation10 + $0x30] sm:$0xff]  ;;  %v756_v54 = vld [vmem:[#allocation10 + $0x28] sm:$0xff]  ;;  %v755_v55 = vld [vmem:[#allocation10 + $0x20] sm:$0xff] }
  0x95   : > { %1199 = vmatpush3.msra.mxu1 %v571_v13  ;;  %1224 = vmatpush3.msra.mxu0 %v671_v24  ;;  %v754_v56 = vld [vmem:[#allocation10 + $0x18] sm:$0xff]  ;;  %v753_v57 = vld [vmem:[#allocation10 + $0x10] sm:$0xff]  ;;  %v752_v1 = vld [vmem:[#allocation10 + $0x8] sm:$0xff] }
  0x96   : > { %1200 = vmatprep.subr.mxu1 %v1669_v0  ;;  %1225 = vmatprep.subr.mxu0 %v1669_v0  ;;  %v1092_v58 = vld [vmem:[%s2062_s4] ss:$0 sm:$0xff]  ;;  %v751_v2 = vld [vmem:[#allocation10] sm:$0xff]  ;;  %v861_v3 = vld [vmem:[#allocation11 + $0x78] sm:$0xff] }
  0x97   : > { %1201 = vmatpush3.msra.mxu1 %v570_v14  ;;  %1226 = vmatpush3.msra.mxu0 %v670_v25  ;;  %v860_v4 = vld [vmem:[#allocation11 + $0x70] sm:$0xff]  ;;  %v859_v5 = vld [vmem:[#allocation11 + $0x68] sm:$0xff]  ;;  %v858_v6 = vld [vmem:[#allocation11 + $0x60] sm:$0xff] }
  0x98   : > { %1202 = vmatprep.subr.mxu1 %v1669_v0  ;;  %1227 = vmatprep.subr.mxu0 %v1669_v0  ;;  %v857_v7 = vld [vmem:[#allocation11 + $0x58] sm:$0xff]  ;;  %v856_v8 = vld [vmem:[#allocation11 + $0x50] sm:$0xff]  ;;  %v855_v9 = vld [vmem:[#allocation11 + $0x48] sm:$0xff] }
  0x99   : > { %1203 = vmatpush3.msra.mxu1 %v569_v15  ;;  %1228 = vmatpush3.msra.mxu0 %v669_v26  ;;  %v854_v10 = vld [vmem:[#allocation11 + $0x40] sm:$0xff]  ;;  %v853_v11 = vld [vmem:[#allocation11 + $0x38] sm:$0xff]  ;;  %v852_v12 = vld [vmem:[#allocation11 + $0x30] sm:$0xff] }
  0x9a   : > { %1204 = vmatprep.subr.mxu1 %v1669_v0  ;;  %1229 = vmatprep.subr.mxu0 %v1669_v0  ;;  %v851_v13 = vld [vmem:[#allocation11 + $0x28] sm:$0xff]  ;;  %v850_v14 = vld [vmem:[#allocation11 + $0x20] sm:$0xff]  ;;  %v1093_v15 = vld [vmem:[%s2064_s6] ss:$0 sm:$0xff] }
  0x9b   : > { %1205 = vmatpush3.msra.mxu1 %v568_v16  ;;  %1230 = vmatpush3.msra.mxu0 %v668_v27  ;;  %v846_v22 = vld [vmem:[#allocation11] sm:$0xff]  ;;  %v1094_v23 = vld [vmem:[%s2066_s8] ss:$0 sm:$0xff] }
  0x9c   : > { %1206 = vmatprep.subr.mxu1 %v1669_v0  ;;  %1231 = vmatprep.subr.mxu0 %v1669_v0 }
  0x9d   : > { %1207 = vmatpush3.msra.mxu1 %v567_v17  ;;  %1232 = vmatpush3.msra.mxu0 %v667_v28 }
  0x9e   : > { %1208 = vmatprep.subr.mxu1 %v1669_v0  ;;  %1233 = vmatprep.subr.mxu0 %v1669_v0 }
  0x9f   : > { %1209 = vmatpush3.msra.mxu1 %v566_v18  ;;  %1234 = vmatpush3.msra.mxu0 %v666_v29  ;;  %v1095_v29 = vld [vmem:[%s2068_s10] ss:$0 sm:$0xff] }
  0xa0   : > { %1210 = vmatprep.subr.mxu1 %v1669_v0  ;;  %1235 = vmatprep.subr.mxu0 %v1669_v0 }
  0xa1   : > { %1211 = vmatpush3.msra.mxu1 %v565_v19  ;;  %1236 = vmatpush3.msra.mxu0 %v665_v30  ;;  %v849_v19 = vld [vmem:[#allocation11 + $0x18] sm:$0xff] }
  0xa2   : > { %1212 = vmatprep.subr.mxu1 %v1669_v0  ;;  %1237 = vmatprep.subr.mxu0 %v1669_v0 }
  0xa3   : > { %1213 = vmatpush3.msra.mxu1 %v564_v20  ;;  %1238 = vmatpush3.msra.mxu0 %v664_v31  ;;  %v848_v20 = vld [vmem:[#allocation11 + $0x10] sm:$0xff] }
  0xa4   : > { %1214 = vmatprep.subr.mxu1 %v1669_v0  ;;  %1239 = vmatprep.subr.mxu0 %v1669_v0 }
  0xa5   : > { %1215 = vmatpush3.msra.mxu1 %v563_v21  ;;  %1240 = vmatpush3.msra.mxu0 %v663_v32  ;;  %v847_v21 = vld [vmem:[#allocation11 + $0x8] sm:$0xff] }
  0xa6   : > { %1254 = vmatprep.subr.mxu1 %v1669_v0  ;;  %1241 = vmatprep.subr.mxu0 %v1669_v0 }
  0xa7   : > { %1242 = vmatpush3.msra.mxu0 %v662_v33 }
  0xa8   : > { %1243 = vmatprep.subr.mxu0 %v1669_v0 }
  0xa9   : > { %1244 = vmatpush3.msra.mxu0 %v661_v40 }
  0xaa   : > { %1245 = vmatprep.subr.mxu0 %v1669_v0 }
  0xab   : > { %1246 = vmatpush3.msra.mxu0 %v660_v41 }
  0xac   : > { %1247 = vmatprep.subr.mxu0 %v1669_v0 }
  0xad   : > { %1248 = vmatpush3.msra.mxu0 %v659_v42 }
  0xae   : > { %1249 = vmatprep.subr.mxu0 %v1669_v0 }
  0xaf   : > { %1250 = vmatpush3.msra.mxu0 %v658_v43 }
  0xb0   : > { %1289 = vmatprep.subr.mxu0 %v1669_v0 }
 0x14e   : > { %v557_v35 = vpop.f32.mrf.mxu0 }
 0x14f   : > { %v558_v36 = vadd.f32 %v1090_v34, %v557_v35 }
 0x150   : > { %v1183_v37 = vpop.f32.mrf.mxu0 }
 0x151   : > { %v561_v38 = vmul.f32 0.1, %v558_v36 }
 0x153   : > { %v562_v39 = vmax.f32 %v558_v36, %v561_v38 }
 0x155   : > { %1217 = vmatmul.mubr.f32.vlgmr.msra.gmra.mxu1 %v562_v39 }
 0x156   : > { %1286 = vmatprep.mubr.msk.f32.mxu1 %vm1670_vm0, %v1669_v0  ;;  %1255 = vmatpush3.msra.mxu1 %v766_v44 }
 0x157   : > { %1256 = vmatprep.subr.mxu1 %v1669_v0 }
 0x158   : > { %1257 = vmatpush3.msra.mxu1 %v765_v45 }
 0x159   : > { %1258 = vmatprep.subr.mxu1 %v1669_v0 }
 0x15a   : > { %1259 = vmatpush3.msra.mxu1 %v764_v46 }
 0x15b   : > { %1260 = vmatprep.subr.mxu1 %v1669_v0 }
 0x15c   : > { %1261 = vmatpush3.msra.mxu1 %v763_v47 }
 0x15d   : > { %1262 = vmatprep.subr.mxu1 %v1669_v0 }
 0x15e   : > { %1263 = vmatpush3.msra.mxu1 %v762_v48 }
 0x15f   : > { %1264 = vmatprep.subr.mxu1 %v1669_v0 }
 0x160   : > { %1265 = vmatpush3.msra.mxu1 %v761_v49 }
 0x161   : > { %1266 = vmatprep.subr.mxu1 %v1669_v0 }
 0x162   : > { %1267 = vmatpush3.msra.mxu1 %v760_v50 }
 0x163   : > { %1268 = vmatprep.subr.mxu1 %v1669_v0 }
 0x164   : > { %1269 = vmatpush3.msra.mxu1 %v759_v51 }
 0x165   : > { %1270 = vmatprep.subr.mxu1 %v1669_v0 }
 0x166   : > { %1271 = vmatpush3.msra.mxu1 %v758_v52 }
 0x167   : > { %1272 = vmatprep.subr.mxu1 %v1669_v0 }
 0x168   : > { %1273 = vmatpush3.msra.mxu1 %v757_v53 }
 0x169   : > { %1274 = vmatprep.subr.mxu1 %v1669_v0 }
 0x16a   : > { %1275 = vmatpush3.msra.mxu1 %v756_v54 }
 0x16b   : > { %1276 = vmatprep.subr.mxu1 %v1669_v0 }
 0x16c   : > { %1277 = vmatpush3.msra.mxu1 %v755_v55 }
 0x16d   : > { %1278 = vmatprep.subr.mxu1 %v1669_v0 }
 0x16e   : > { %1279 = vmatpush3.msra.mxu1 %v754_v56 }
 0x16f   : > { %1280 = vmatprep.subr.mxu1 %v1669_v0 }
 0x170   : > { %1281 = vmatpush3.msra.mxu1 %v753_v57 }
 0x171   : > { %1282 = vmatprep.subr.mxu1 %v1669_v0 }
 0x172   : > { %1283 = vmatpush3.msra.mxu1 %v752_v1 }
 0x173   : > { %1284 = vmatprep.subr.mxu1 %v1669_v0 }
 0x174   : > { %1285 = vmatpush3.msra.mxu1 %v751_v2 }
 0x215   : > { %v652_v59 = vpop.f32.mrf.mxu1 }
 0x216   : > { %v653_v60 = vadd.f32 %v1092_v58, %v652_v59 }
 0x217   : > { %v1218_v61 = vpop.f32.mrf.mxu1 }
 0x218   : > { %v656_v62 = vmul.f32 0.1, %v653_v60 }
 0x21a   : > { %v657_v63 = vmax.f32 %v653_v60, %v656_v62 }
 0x21c   : > { %1252 = vmatmul.mubr.f32.vlgmr.msra.gmra.mxu0 %v657_v63 }
 0x21d   : > { %1321 = vmatprep.mubr.msk.f32.mxu0 %vm1670_vm0, %v1669_v0  ;;  %1290 = vmatpush3.msra.mxu0 %v861_v3 }
 0x21e   : > { %1291 = vmatprep.subr.mxu0 %v1669_v0 }
 0x21f   : > { %1292 = vmatpush3.msra.mxu0 %v860_v4 }
 0x220   : > { %1293 = vmatprep.subr.mxu0 %v1669_v0 }
 0x221   : > { %1294 = vmatpush3.msra.mxu0 %v859_v5 }
 0x222   : > { %1295 = vmatprep.subr.mxu0 %v1669_v0 }
 0x223   : > { %1296 = vmatpush3.msra.mxu0 %v858_v6 }
 0x224   : > { %1297 = vmatprep.subr.mxu0 %v1669_v0 }
 0x225   : > { %1298 = vmatpush3.msra.mxu0 %v857_v7 }
 0x226   : > { %1299 = vmatprep.subr.mxu0 %v1669_v0 }
 0x227   : > { %1300 = vmatpush3.msra.mxu0 %v856_v8 }
 0x228   : > { %1301 = vmatprep.subr.mxu0 %v1669_v0 }
 0x229   : > { %1302 = vmatpush3.msra.mxu0 %v855_v9 }
 0x22a   : > { %1303 = vmatprep.subr.mxu0 %v1669_v0 }
 0x22b   : > { %1304 = vmatpush3.msra.mxu0 %v854_v10 }
 0x22c   : > { %1305 = vmatprep.subr.mxu0 %v1669_v0 }
 0x22d   : > { %1306 = vmatpush3.msra.mxu0 %v853_v11 }
 0x22e   : > { %1307 = vmatprep.subr.mxu0 %v1669_v0 }
 0x22f   : > { %1308 = vmatpush3.msra.mxu0 %v852_v12 }
 0x230   : > { %1309 = vmatprep.subr.mxu0 %v1669_v0 }
 0x231   : > { %1310 = vmatpush3.msra.mxu0 %v851_v13 }
 0x232   : > { %1311 = vmatprep.subr.mxu0 %v1669_v0 }
 0x233   : > { %1312 = vmatpush3.msra.mxu0 %v850_v14 }
 0x234   : > { %1313 = vmatprep.subr.mxu0 %v1669_v0 }
 0x235   : > { %1314 = vmatpush3.msra.mxu0 %v849_v19 }
 0x236   : > { %1315 = vmatprep.subr.mxu0 %v1669_v0 }
 0x237   : > { %1316 = vmatpush3.msra.mxu0 %v848_v20 }
 0x238   : > { %1317 = vmatprep.subr.mxu0 %v1669_v0 }
 0x239   : > { %1318 = vmatpush3.msra.mxu0 %v847_v21 }
 0x23a   : > { %1319 = vmatprep.subr.mxu0 %v1669_v0 }
 0x23b   : > { %1320 = vmatpush3.msra.mxu0 %v846_v22 }
 0x2dc   : > { %v747_v16 = vpop.f32.mrf.mxu0 }
 0x2dd   : > { %v748_v17 = vadd.f32 %v1093_v15, %v747_v16 }
 0x2de   : > { %v1253_v18 = vpop.f32.mrf.mxu0 }
 0x2df   : > { %1287 = vmatmul.mubr.f32.vlgmr.msra.gmra.mxu1 %v748_v17 }
 0x39f   : > { %v840_v24 = vpop.f32.mrf.mxu1 }
 0x3a0   : > { %v841_v25 = vadd.f32 %v1094_v23, %v840_v24 }
 0x3a1   : > { %v1288_v26 = vpop.f32.mrf.mxu1 }
 0x3a2   : > { %v844_v27 = vmul.f32 0.1, %v841_v25 }
 0x3a4   : > { %v845_v28 = vmax.f32 %v841_v25, %v844_v27 }
 0x3a6   : > { %1322 = vmatmul.mubr.f32.vlgmr.msra.gmra.mxu0 %v845_v28 }
 0x466   : > { %v935_v0 = vpop.f32.mrf.mxu0 }
 0x467   : > { %v936_v30 = vadd.f32 %v1095_v29, %v935_v0 }
 0x468   : > { %v1323_v31 = vpop.f32.mrf.mxu0 }
 0x469   : > { %939 = vst [vmem:[%s474_s14] sm:$0xff] %v936_v30 }
 0x46a   : > { %1596 = shalt.err (!%p1593_p1)
}
 0x46b   : > { %s1597_s27 = scalar_lea.hbm %s2021_s3, 128  ;;  %s1601_s15 = scalar_lea.hbm %s2069_s11, 256 }
 0x46c   : > { %p1598_p3 = scmp.ne.s32.totalorder %s2021_s3, %s1597_s27  ;;  %p1602_p6 = scmp.lt.s32.totalorder %s2021_s3, %s2069_s11 }
 0x46d   : > { %p1603_p2 = scmp.lt.s32.totalorder %s1601_s15, %s1597_s27 }
 0x46e   : > { %p1599_p4 = pnand %p1598_p3, %p2100_p11 }
 0x46f   : > { %p1604_p7 = por %p1603_p2, %p1602_p6 }
 0x470   : > { %p1600_p12 = pneg %p1599_p4 }
 0x472   : > { %p1605_p8 = pnand %p1604_p7, %p1600_p12 }
 0x474   : > { %1608 = shalt.err (!%p1605_p8)
}
 0x475   : > { %1346 = dma.vmem_to_hbm [thread:$0]  (%p2100_p11), %s955_s9, 128, %s2021_s3, %s941_s24  }
 0x476 PF: > { %s966_s21 = sand.u32 1, %s1647_s17   ;;  %p2101_p0 = scmp.ne.s32.totalorder %s2090_s25, 0 }
 0x477   : > { %p2102_p13 = scmp.ge.s32.totalorder %s1659_s20, 2  ;;  %s967_s14 = scalar_lea.sflag [#allocation4], %s966_s21 }
 0x479   : > { %p1369_p5 = pnand %p2102_p13, %p2101_p0 }
 0x47b   : > { %p1370_p9 = pneg %p1369_p5 }
 0x47d   : > { %1642 = dma.done.wait (%p1370_p9), %s967_s14, 128  }
 0x47e   : > { %1644 = vsyncadd (%p1370_p9), %s967_s14, 4294967168  ;;  %s2103_s28 = sld [smem:[#allocation19_spill]]  ;;  %p27_p10 = scmp.ge.s32.totalorder %s1843_s30, 4  }
 0x47f   : > { %s2104_s17 = smov %s1651_s18  ;;  %s2105_s18 = smov %s1655_s19 }
 0x480   : > { %s2107_s20 = smov %s1843_s30  ;;  %29 = sbr.rel (!%p27_p10) target bundleno = 14 (0xe), region = 129 }
 0x484   : > { %s2106_s19 = smov %s2103_s28 }
 0x485   :  { %972 = vsyncpa [#allocation3], 1 }
 0x486   :  { %974 = vsyncpa [#allocation3 + $0x1], 1 }
 0x487   :  { %975 = vsyncpa [#allocation6], 1 }
 0x488   :  { %976 = vsyncpa [#allocation9], 1 }
 0x489   :  { %977 = vsyncpa [#allocation12], 1 }
 0x48a   :  { %978 = vsyncpa [#allocation4], 1 }
 0x48b   :  { %980 = vsyncpa [#allocation4 + $0x1], 1 }

</bundles_post_ra>
